<compile_context>
chip_gen: v6e
topology: v6e:2x2x1
jax: 0.10.0
libtpu: 0.0.40
codegen_flags: <defaults>
</compile_context>

<pallas_src>
import functools

import jax
import jax.numpy as jnp
from jax import lax
from jax.experimental import pallas as pl
from jax.experimental.pallas import tpu as pltpu


def _vicreg_kernel(z1_ref, z2_ref, out_ref,
                   dsq_ref, sum1_ref, sum2_ref, sumsq1_ref, sumsq2_ref,
                   g1_ref, g2_ref,
                   *, batch, sim_weight, var_weight, cov_weight,
                   std_target, eps):
    step = pl.program_id(0)
    nsteps = pl.num_programs(0)

    @pl.when(step == 0)
    def _init():
        dsq_ref[...] = jnp.zeros_like(dsq_ref)
        sum1_ref[...] = jnp.zeros_like(sum1_ref)
        sum2_ref[...] = jnp.zeros_like(sum2_ref)
        sumsq1_ref[...] = jnp.zeros_like(sumsq1_ref)
        sumsq2_ref[...] = jnp.zeros_like(sumsq2_ref)
        g1_ref[...] = jnp.zeros_like(g1_ref)
        g2_ref[...] = jnp.zeros_like(g2_ref)

    # Native-dtype tiles feed the MXU (bf16 x bf16 -> f32 runs at full MXU rate);
    # f32 copies feed the exact VPU column statistics.
    z1n = z1_ref[...]
    z2n = z2_ref[...]
    z1 = z1n.astype(jnp.float32)
    z2 = z2n.astype(jnp.float32)

    diff = z1 - z2
    dsq_ref[...] += jnp.sum(diff * diff, axis=0, keepdims=True)
    sum1_ref[...] += jnp.sum(z1, axis=0, keepdims=True)
    sum2_ref[...] += jnp.sum(z2, axis=0, keepdims=True)
    sumsq1_ref[...] += jnp.sum(z1 * z1, axis=0, keepdims=True)
    sumsq2_ref[...] += jnp.sum(z2 * z2, axis=0, keepdims=True)

    # Un-normalized Grams z^T z: contract the batch axis of both operands
    # directly (no .T / XLU transpose of the tiles), f32 MXU accumulation.
    dn_tt = (((0,), (0,)), ((), ()))
    g1_ref[...] += lax.dot_general(z1n, z1n, dn_tt,
                                   preferred_element_type=jnp.float32)
    g2_ref[...] += lax.dot_general(z2n, z2n, dn_tt,
                                   preferred_element_type=jnp.float32)

    @pl.when(step == nsteps - 1)
    def _finalize():
        B = float(batch)
        dim = g1_ref.shape[-1]
        D = float(dim)
        inv_B = 1.0 / B
        inv_D = 1.0 / D
        inv_BD = 1.0 / (B * D)
        inv_Bm1_sq = 1.0 / ((B - 1.0) * (B - 1.0))

        # --- Variance term: exact f32 VPU sums (independent of MXU precision).
        def var_side(s_ref, ssq_ref):
            s = s_ref[...]                                 # (1, D) column sums
            diag_c = ssq_ref[...] - s * s * inv_B          # B * biased variance
            std = jnp.sqrt(jnp.maximum(diag_c, 0.0) * inv_B + eps)
            return jnp.sum(jnp.maximum(std_target - std, 0.0)) * inv_D

        # --- Off-diagonal sum of squares of the centered Gram, algebraically:
        #   sum(G_c^2) = sum(G^2) - (2/B) s^T G s + (sum s^2)^2 / B^2
        # No centered Gram / rank-1 correction is materialized.  diag_c is
        # sourced from the same Gram so the diagonal cancellation stays
        # consistent with G's rounding (important for bf16 MXU operands).
        row = lax.broadcasted_iota(jnp.int32, (dim, dim), 0)
        col = lax.broadcasted_iota(jnp.int32, (dim, dim), 1)
        diag_mask = row == col

        def off_side(s_ref, g_ref):
            s = s_ref[...]                                 # (1, D)
            g = g_ref[...]                                 # (D, D)
            sum_g2 = jnp.sum(g * g)
            t = lax.dot_general(s, g, (((1,), (0,)), ((), ())),
                                preferred_element_type=jnp.float32)   # (1, D)
            quad = jnp.sum(t * s)                          # s^T G s
            ssq_tot = jnp.sum(s * s)
            sum_gc2 = (sum_g2 - 2.0 * inv_B * quad
                       + ssq_tot * ssq_tot * (inv_B * inv_B))
            diag_g = jnp.sum(jnp.where(diag_mask, g, 0.0), axis=0, keepdims=True)
            diag_c = diag_g - s * s * inv_B
            return sum_gc2 - jnp.sum(diag_c * diag_c)

        var_loss = var_side(sum1_ref, sumsq1_ref) + var_side(sum2_ref, sumsq2_ref)
        off_sq = off_side(sum1_ref, g1_ref) + off_side(sum2_ref, g2_ref)

        invariance_loss = jnp.sum(dsq_ref[...]) * inv_BD
        cov_loss = off_sq * (inv_Bm1_sq * inv_D)

        out_ref[0, 0] = (sim_weight * invariance_loss +
                         var_weight * var_loss +
                         cov_weight * cov_loss)


def _tpu_vmem_budget_bytes():
    """Per-TensorCore VMEM capacity minus ~15% headroom (generation-aware)."""
    cap = None
    try:
        cap = getattr(pltpu.get_tpu_info(), "vmem_capacity_bytes", None)
    except Exception:
        cap = None
    if not cap:
        cap = 64 << 20          # conservative fallback (v7x per-TC floor)
    return int(cap) * 85 // 100


def _pick_batch_tile(batch, dim, itemsize, vmem_budget, n_buffers):
    # Per-row cost: n_buffers x 2 native-dtype input tiles + ~4 f32 (TB, D) temps.
    per_row = 2 * n_buffers * dim * itemsize + 4 * dim * 4
    # Persistent: 2 D x D f32 Grams + ~2 D x D f32 finalize temps + (1, D) accs.
    # TODO(synk): if this does not fit the per-generation budget (huge D),
    # column-tile the Grams instead of relying on full residency.
    persistent = 4 * dim * dim * 4 + 8 * 8 * dim * 4
    avail = vmem_budget - persistent - (4 << 20)
    tb = avail // per_row if avail > 0 else 128
    tb = int(max(128, min(512, tb)))
    tb = (tb // 16) * 16                      # whole bf16-packed sublanes
    if batch <= tb:
        return batch                          # single full-extent tile
    return tb


def vicreg_loss_pallas(z1, z2, *, sim_weight=25.0, var_weight=25.0,
                       cov_weight=1.0, std_target=1.0, eps=1e-4):
    assert z1.shape == z2.shape and z1.ndim == 2
    assert z1.dtype == z2.dtype
    B, D = z1.shape
    assert B >= 2, "VICReg covariance divides by (batch - 1); need batch >= 2"

    itemsize = int(jnp.dtype(z1.dtype).itemsize)
    vmem_budget = _tpu_vmem_budget_bytes()

    # Deeper input buffering when streaming-bound (small D leaves the MXU slack;
    # DMA latency / per-step overhead dominate).
    want_deep = D <= 512
    n_buf = 3 if want_deep else 2

    TB = _pick_batch_tile(B, D, itemsize, vmem_budget, n_buf)
    pad = (-B) % TB
    if pad:
        # Zero rows contribute nothing to any accumulated sum / Gram; every
        # normalization inside the kernel uses the true batch size B.
        z1 = jnp.pad(z1, ((0, pad), (0, 0)))
        z2 = jnp.pad(z2, ((0, pad), (0, 0)))
    nsteps = (B + pad) // TB
    use_deep = want_deep and nsteps >= 4
    n_buf = 3 if use_deep else 2

    kernel = functools.partial(
        _vicreg_kernel,
        batch=B, sim_weight=float(sim_weight), var_weight=float(var_weight),
        cov_weight=float(cov_weight), std_target=float(std_target),
        eps=float(eps))

    vmem_needed = (2 * n_buf * TB * D * itemsize   # pipelined input tiles
                   + 4 * TB * D * 4                # f32 in-kernel temporaries
                   + 4 * D * D * 4                 # Grams + finalize temporaries
                   + 8 * 8 * D * 4                 # (1, D) accumulators (padded)
                   + (2 << 20))                    # headroom
    vmem_limit = int(min(max(vmem_needed, 32 << 20), vmem_budget))

    cost = pl.CostEstimate(
        flops=int(4 * B * D * D + 14 * B * D + 10 * D * D),
        transcendentals=int(2 * D),
        bytes_accessed=int(2 * (B + pad) * D * itemsize + 4))

    if use_deep:
        in_spec = pl.BlockSpec((TB, D), lambda i: (i, 0),
                               pipeline_mode=pl.Buffered(3))
    else:
        in_spec = pl.BlockSpec((TB, D), lambda i: (i, 0))

    grid_spec = pltpu.PrefetchScalarGridSpec(
        num_scalar_prefetch=0,
        grid=(nsteps,),
        in_specs=[in_spec, in_spec],
        out_specs=pl.BlockSpec((1, 1), lambda i: (0, 0),
                               memory_space=pltpu.MemorySpace.SMEM),
        scratch_shapes=[pltpu.VMEM((1, D), jnp.float32)] * 5
                     + [pltpu.VMEM((D, D), jnp.float32)] * 2)

    out = pl.pallas_call(
        kernel,
        out_shape=jax.ShapeDtypeStruct((1, 1), jnp.float32),
        grid_spec=grid_spec,
        compiler_params=pltpu.CompilerParams(
            dimension_semantics=("arbitrary",),
            vmem_limit_bytes=vmem_limit),
        cost_estimate=cost,
    )(z1, z2)
    return out[0, 0]


def vicreg_loss_ref(z1, z2, *, sim_weight=25.0, var_weight=25.0,
                    cov_weight=1.0, std_target=1.0, eps=1e-4):
    # Pure-JAX reference mirroring the PyTorch forward (var unbiased=False,
    # cov normalized by (B-1), off-diagonal sum of squares / D).
    z1 = z1.astype(jnp.float32)
    z2 = z2.astype(jnp.float32)
    inv = jnp.mean((z1 - z2) ** 2)
    z1 = z1 - jnp.mean(z1, axis=0, keepdims=True)
    z2 = z2 - jnp.mean(z2, axis=0, keepdims=True)
    std1 = jnp.sqrt(jnp.var(z1, axis=0) + eps)
    std2 = jnp.sqrt(jnp.var(z2, axis=0) + eps)
    var_loss = (jnp.mean(jax.nn.relu(std_target - std1)) +
                jnp.mean(jax.nn.relu(std_target - std2)))
    B, D = z1.shape
    cov1 = z1.T @ z1 / (B - 1)
    cov2 = z2.T @ z2 / (B - 1)
    mask = 1.0 - jnp.eye(D, dtype=jnp.float32)
    cov_loss = jnp.sum((cov1 * mask) ** 2) / D + jnp.sum((cov2 * mask) ** 2) / D
    return sim_weight * inv + var_weight * var_loss + cov_weight * cov_loss


if __name__ == "__main__":
    key = jax.random.PRNGKey(0)
    k1, k2 = jax.random.split(key)
    batch, dim = 8, 32
    z1 = jax.random.normal(k1, (batch, dim), dtype=jnp.float32)
    z2 = z1 + 0.1 * jax.random.normal(k2, (batch, dim), dtype=jnp.float32)

    loss = jax.block_until_ready(vicreg_loss_pallas(z1, z2))
    ref = jax.block_until_ready(vicreg_loss_ref(z1, z2))

    # Tolerance covers the documented uncentered-Gram / algebraic-expansion
    # formulation vs the centered PyTorch-style reference.
    assert jnp.allclose(loss, ref, rtol=1e-3, atol=1e-3), (loss, ref)
    print("KERNEL_OK")
</pallas_src>

<mosaic_0001>
module attributes {stable_mosaic.version = 11 : i64} {
  func.func @_vicreg_kernel(%arg0: i32, %arg1: memref<8x32xf32, #tpu.memory_space<vmem>>, %arg2: memref<8x32xf32, #tpu.memory_space<vmem>>, %arg3: memref<1x1xf32, #tpu.memory_space<smem>>, %arg4: memref<1x32xf32, #tpu.memory_space<vmem>>, %arg5: memref<1x32xf32, #tpu.memory_space<vmem>>, %arg6: memref<1x32xf32, #tpu.memory_space<vmem>>, %arg7: memref<1x32xf32, #tpu.memory_space<vmem>>, %arg8: memref<1x32xf32, #tpu.memory_space<vmem>>, %arg9: memref<32x32xf32, #tpu.memory_space<vmem>>, %arg10: memref<32x32xf32, #tpu.memory_space<vmem>>) attributes {dimension_semantics = [#tpu.dimension_semantics<arbitrary>], iteration_bounds = array<i64: 1>, scalar_prefetch = 0 : i64, scratch_operands = 7 : i64, tpu.core_type = #tpu.core_type<tc>, window_params = [{transform_indices = @transform_0, window_bounds = array<i64: 8, 32>}, {transform_indices = @transform_1, window_bounds = array<i64: 8, 32>}, {transform_indices = @transform_2, window_bounds = array<i64: 1, 1>}]} {
    %c0_i32 = arith.constant 0 : i32
    %0 = arith.cmpi eq, %arg0, %c0_i32 : i32
    %1 = arith.extui %0 : i1 to i32
    %c0_i32_0 = arith.constant 0 : i32
    %2 = arith.cmpi ne, %1, %c0_i32_0 : i32
    scf.if %2 {
      %cst_40 = arith.constant 0.000000e+00 : f32
      %45 = vector.broadcast %cst_40 : f32 to vector<1x32xf32>
      %c0_41 = arith.constant 0 : index
      %c0_42 = arith.constant 0 : index
      %46 = vector.load %arg4[%c0_41, %c0_42] : memref<1x32xf32, #tpu.memory_space<vmem>>, vector<1x32xf32>
      tpu.vector_store %arg4[%c0_41, %c0_42], %45 {strides = array<i32>} : memref<1x32xf32, #tpu.memory_space<vmem>>, vector<1x32xf32>,
      %cst_43 = arith.constant 0.000000e+00 : f32
      %47 = vector.broadcast %cst_43 : f32 to vector<1x32xf32>
      %c0_44 = arith.constant 0 : index
      %c0_45 = arith.constant 0 : index
      %48 = vector.load %arg5[%c0_44, %c0_45] : memref<1x32xf32, #tpu.memory_space<vmem>>, vector<1x32xf32>
      tpu.vector_store %arg5[%c0_44, %c0_45], %47 {strides = array<i32>} : memref<1x32xf32, #tpu.memory_space<vmem>>, vector<1x32xf32>,
      %cst_46 = arith.constant 0.000000e+00 : f32
      %49 = vector.broadcast %cst_46 : f32 to vector<1x32xf32>
      %c0_47 = arith.constant 0 : index
      %c0_48 = arith.constant 0 : index
      %50 = vector.load %arg6[%c0_47, %c0_48] : memref<1x32xf32, #tpu.memory_space<vmem>>, vector<1x32xf32>
      tpu.vector_store %arg6[%c0_47, %c0_48], %49 {strides = array<i32>} : memref<1x32xf32, #tpu.memory_space<vmem>>, vector<1x32xf32>,
      %cst_49 = arith.constant 0.000000e+00 : f32
      %51 = vector.broadcast %cst_49 : f32 to vector<1x32xf32>
      %c0_50 = arith.constant 0 : index
      %c0_51 = arith.constant 0 : index
      %52 = vector.load %arg7[%c0_50, %c0_51] : memref<1x32xf32, #tpu.memory_space<vmem>>, vector<1x32xf32>
      tpu.vector_store %arg7[%c0_50, %c0_51], %51 {strides = array<i32>} : memref<1x32xf32, #tpu.memory_space<vmem>>, vector<1x32xf32>,
      %cst_52 = arith.constant 0.000000e+00 : f32
      %53 = vector.broadcast %cst_52 : f32 to vector<1x32xf32>
      %c0_53 = arith.constant 0 : index
      %c0_54 = arith.constant 0 : index
      %54 = vector.load %arg8[%c0_53, %c0_54] : memref<1x32xf32, #tpu.memory_space<vmem>>, vector<1x32xf32>
      tpu.vector_store %arg8[%c0_53, %c0_54], %53 {strides = array<i32>} : memref<1x32xf32, #tpu.memory_space<vmem>>, vector<1x32xf32>,
      %cst_55 = arith.constant 0.000000e+00 : f32
      %55 = vector.broadcast %cst_55 : f32 to vector<32x32xf32>
      %c0_56 = arith.constant 0 : index
      %c0_57 = arith.constant 0 : index
      %56 = vector.load %arg9[%c0_56, %c0_57] : memref<32x32xf32, #tpu.memory_space<vmem>>, vector<32x32xf32>
      tpu.vector_store %arg9[%c0_56, %c0_57], %55 {strides = array<i32>} : memref<32x32xf32, #tpu.memory_space<vmem>>, vector<32x32xf32>,
      %cst_58 = arith.constant 0.000000e+00 : f32
      %57 = vector.broadcast %cst_58 : f32 to vector<32x32xf32>
      %c0_59 = arith.constant 0 : index
      %c0_60 = arith.constant 0 : index
      %58 = vector.load %arg10[%c0_59, %c0_60] : memref<32x32xf32, #tpu.memory_space<vmem>>, vector<32x32xf32>
      tpu.vector_store %arg10[%c0_59, %c0_60], %57 {strides = array<i32>} : memref<32x32xf32, #tpu.memory_space<vmem>>, vector<32x32xf32>,
    } else {
    }
    %c0 = arith.constant 0 : index
    %c0_1 = arith.constant 0 : index
    %3 = vector.load %arg1[%c0, %c0_1] : memref<8x32xf32, #tpu.memory_space<vmem>>, vector<8x32xf32>
    %c0_2 = arith.constant 0 : index
    %c0_3 = arith.constant 0 : index
    %4 = vector.load %arg2[%c0_2, %c0_3] : memref<8x32xf32, #tpu.memory_space<vmem>>, vector<8x32xf32>
    %5 = arith.subf %3, %4 : vector<8x32xf32>
    %c0_4 = arith.constant 0 : index
    %c0_5 = arith.constant 0 : index
    %6 = vector.load %arg4[%c0_4, %c0_5] : memref<1x32xf32, #tpu.memory_space<vmem>>, vector<1x32xf32>
    %7 = arith.mulf %5, %5 : vector<8x32xf32>
    %cst = arith.constant dense<0.000000e+00> : vector<32xf32>
    %8 = vector.multi_reduction <add>, %7, %cst [0] : vector<8x32xf32> to vector<32xf32>
    %9 = vector.shape_cast %8 : vector<32xf32> to vector<1x32xf32>
    %10 = arith.addf %6, %9 : vector<1x32xf32>
    %c0_6 = arith.constant 0 : index
    %c0_7 = arith.constant 0 : index
    %11 = vector.load %arg4[%c0_6, %c0_7] : memref<1x32xf32, #tpu.memory_space<vmem>>, vector<1x32xf32>
    tpu.vector_store %arg4[%c0_6, %c0_7], %10 {strides = array<i32>} : memref<1x32xf32, #tpu.memory_space<vmem>>, vector<1x32xf32>,
    %c0_8 = arith.constant 0 : index
    %c0_9 = arith.constant 0 : index
    %12 = vector.load %arg5[%c0_8, %c0_9] : memref<1x32xf32, #tpu.memory_space<vmem>>, vector<1x32xf32>
    %cst_10 = arith.constant dense<0.000000e+00> : vector<32xf32>
    %13 = vector.multi_reduction <add>, %3, %cst_10 [0] : vector<8x32xf32> to vector<32xf32>
    %14 = vector.shape_cast %13 : vector<32xf32> to vector<1x32xf32>
    %15 = arith.addf %12, %14 : vector<1x32xf32>
    %c0_11 = arith.constant 0 : index
    %c0_12 = arith.constant 0 : index
    %16 = vector.load %arg5[%c0_11, %c0_12] : memref<1x32xf32, #tpu.memory_space<vmem>>, vector<1x32xf32>
    tpu.vector_store %arg5[%c0_11, %c0_12], %15 {strides = array<i32>} : memref<1x32xf32, #tpu.memory_space<vmem>>, vector<1x32xf32>,
    %c0_13 = arith.constant 0 : index
    %c0_14 = arith.constant 0 : index
    %17 = vector.load %arg6[%c0_13, %c0_14] : memref<1x32xf32, #tpu.memory_space<vmem>>, vector<1x32xf32>
    %cst_15 = arith.constant dense<0.000000e+00> : vector<32xf32>
    %18 = vector.multi_reduction <add>, %4, %cst_15 [0] : vector<8x32xf32> to vector<32xf32>
    %19 = vector.shape_cast %18 : vector<32xf32> to vector<1x32xf32>
    %20 = arith.addf %17, %19 : vector<1x32xf32>
    %c0_16 = arith.constant 0 : index
    %c0_17 = arith.constant 0 : index
    %21 = vector.load %arg6[%c0_16, %c0_17] : memref<1x32xf32, #tpu.memory_space<vmem>>, vector<1x32xf32>
    tpu.vector_store %arg6[%c0_16, %c0_17], %20 {strides = array<i32>} : memref<1x32xf32, #tpu.memory_space<vmem>>, vector<1x32xf32>,
    %c0_18 = arith.constant 0 : index
    %c0_19 = arith.constant 0 : index
    %22 = vector.load %arg7[%c0_18, %c0_19] : memref<1x32xf32, #tpu.memory_space<vmem>>, vector<1x32xf32>
    %23 = arith.mulf %3, %3 : vector<8x32xf32>
    %cst_20 = arith.constant dense<0.000000e+00> : vector<32xf32>
    %24 = vector.multi_reduction <add>, %23, %cst_20 [0] : vector<8x32xf32> to vector<32xf32>
    %25 = vector.shape_cast %24 : vector<32xf32> to vector<1x32xf32>
    %26 = arith.addf %22, %25 : vector<1x32xf32>
    %c0_21 = arith.constant 0 : index
    %c0_22 = arith.constant 0 : index
    %27 = vector.load %arg7[%c0_21, %c0_22] : memref<1x32xf32, #tpu.memory_space<vmem>>, vector<1x32xf32>
    tpu.vector_store %arg7[%c0_21, %c0_22], %26 {strides = array<i32>} : memref<1x32xf32, #tpu.memory_space<vmem>>, vector<1x32xf32>,
    %c0_23 = arith.constant 0 : index
    %c0_24 = arith.constant 0 : index
    %28 = vector.load %arg8[%c0_23, %c0_24] : memref<1x32xf32, #tpu.memory_space<vmem>>, vector<1x32xf32>
    %29 = arith.mulf %4, %4 : vector<8x32xf32>
    %cst_25 = arith.constant dense<0.000000e+00> : vector<32xf32>
    %30 = vector.multi_reduction <add>, %29, %cst_25 [0] : vector<8x32xf32> to vector<32xf32>
    %31 = vector.shape_cast %30 : vector<32xf32> to vector<1x32xf32>
    %32 = arith.addf %28, %31 : vector<1x32xf32>
    %c0_26 = arith.constant 0 : index
    %c0_27 = arith.constant 0 : index
    %33 = vector.load %arg8[%c0_26, %c0_27] : memref<1x32xf32, #tpu.memory_space<vmem>>, vector<1x32xf32>
    tpu.vector_store %arg8[%c0_26, %c0_27], %32 {strides = array<i32>} : memref<1x32xf32, #tpu.memory_space<vmem>>, vector<1x32xf32>,
    %c0_28 = arith.constant 0 : index
    %c0_29 = arith.constant 0 : index
    %34 = vector.load %arg9[%c0_28, %c0_29] : memref<32x32xf32, #tpu.memory_space<vmem>>, vector<32x32xf32>
    %cst_30 = arith.constant dense<0.000000e+00> : vector<32x32xf32>
    %35 = tpu.matmul %3, %3, %cst_30 {dimension_numbers = #tpu.dot_dimension_numbers<[0], [0], [1], [1], [0, 1, 1, 1], [], []>} : vector<8x32xf32>, vector<8x32xf32>, vector<32x32xf32> -> vector<32x32xf32>
    %36 = arith.addf %34, %35 : vector<32x32xf32>
    %c0_31 = arith.constant 0 : index
    %c0_32 = arith.constant 0 : index
    %37 = vector.load %arg9[%c0_31, %c0_32] : memref<32x32xf32, #tpu.memory_space<vmem>>, vector<32x32xf32>
    tpu.vector_store %arg9[%c0_31, %c0_32], %36 {strides = array<i32>} : memref<32x32xf32, #tpu.memory_space<vmem>>, vector<32x32xf32>,
    %c0_33 = arith.constant 0 : index
    %c0_34 = arith.constant 0 : index
    %38 = vector.load %arg10[%c0_33, %c0_34] : memref<32x32xf32, #tpu.memory_space<vmem>>, vector<32x32xf32>
    %cst_35 = arith.constant dense<0.000000e+00> : vector<32x32xf32>
    %39 = tpu.matmul %4, %4, %cst_35 {dimension_numbers = #tpu.dot_dimension_numbers<[0], [0], [1], [1], [0, 1, 1, 1], [], []>} : vector<8x32xf32>, vector<8x32xf32>, vector<32x32xf32> -> vector<32x32xf32>
    %40 = arith.addf %38, %39 : vector<32x32xf32>
    %c0_36 = arith.constant 0 : index
    %c0_37 = arith.constant 0 : index
    %41 = vector.load %arg10[%c0_36, %c0_37] : memref<32x32xf32, #tpu.memory_space<vmem>>, vector<32x32xf32>
    tpu.vector_store %arg10[%c0_36, %c0_37], %40 {strides = array<i32>} : memref<32x32xf32, #tpu.memory_space<vmem>>, vector<32x32xf32>,
    %c0_i32_38 = arith.constant 0 : i32
    %42 = arith.cmpi eq, %arg0, %c0_i32_38 : i32
    %43 = arith.extui %42 : i1 to i32
    %c0_i32_39 = arith.constant 0 : i32
    %44 = arith.cmpi ne, %43, %c0_i32_39 : i32
    scf.if %44 {
      %45 = tpu.iota {dimensions = array<i32: 0>} : vector<32x32xi32>
      %46 = tpu.iota {dimensions = array<i32: 1>} : vector<32x32xi32>
      %47 = arith.cmpi eq, %45, %46 : vector<32x32xi32>
      %c0_40 = arith.constant 0 : index
      %c0_41 = arith.constant 0 : index
      %48 = vector.load %arg5[%c0_40, %c0_41] : memref<1x32xf32, #tpu.memory_space<vmem>>, vector<1x32xf32>
      %c0_42 = arith.constant 0 : index
      %c0_43 = arith.constant 0 : index
      %49 = vector.load %arg7[%c0_42, %c0_43] : memref<1x32xf32, #tpu.memory_space<vmem>>, vector<1x32xf32>
      %50 = arith.mulf %48, %48 : vector<1x32xf32>
      %cst_44 = arith.constant 1.250000e-01 : f32
      %51 = vector.broadcast %cst_44 : f32 to vector<1x32xf32>
      %52 = arith.mulf %50, %51 : vector<1x32xf32>
      %53 = arith.subf %49, %52 : vector<1x32xf32>
      %cst_45 = arith.constant 0.000000e+00 : f32
      %54 = vector.broadcast %cst_45 : f32 to vector<1x32xf32>
      %55 = arith.maximumf %53, %54 : vector<1x32xf32>
      %cst_46 = arith.constant 1.250000e-01 : f32
      %56 = vector.broadcast %cst_46 : f32 to vector<1x32xf32>
      %57 = arith.mulf %55, %56 : vector<1x32xf32>
      %cst_47 = arith.constant 9.99999974E-5 : f32
      %58 = vector.broadcast %cst_47 : f32 to vector<1x32xf32>
      %59 = arith.addf %57, %58 : vector<1x32xf32>
      %60 = math.sqrt %59 : vector<1x32xf32>
      %cst_48 = arith.constant 1.000000e+00 : f32
      %61 = vector.broadcast %cst_48 : f32 to vector<1x32xf32>
      %62 = arith.subf %61, %60 : vector<1x32xf32>
      %cst_49 = arith.constant 0.000000e+00 : f32
      %63 = vector.broadcast %cst_49 : f32 to vector<1x32xf32>
      %64 = arith.maximumf %62, %63 : vector<1x32xf32>
      %65 = vector.shape_cast %64 : vector<1x32xf32> to vector<1x1x32xf32>
      %cst_50 = arith.constant dense<0.000000e+00> : vector<1xf32>
      %66 = vector.multi_reduction <add>, %65, %cst_50 [1, 2] : vector<1x1x32xf32> to vector<1xf32>
      %67 = vector.shape_cast %66 : vector<1xf32> to vector<1x1x1xf32>
      %68 = vector.extract %67[0, 0, 0] : f32 from vector<1x1x1xf32>
      %cst_51 = arith.constant 3.125000e-02 : f32
      %69 = arith.mulf %68, %cst_51 : f32
      %c0_52 = arith.constant 0 : index
      %c0_53 = arith.constant 0 : index
      %70 = vector.load %arg6[%c0_52, %c0_53] : memref<1x32xf32, #tpu.memory_space<vmem>>, vector<1x32xf32>
      %c0_54 = arith.constant 0 : index
      %c0_55 = arith.constant 0 : index
      %71 = vector.load %arg8[%c0_54, %c0_55] : memref<1x32xf32, #tpu.memory_space<vmem>>, vector<1x32xf32>
      %72 = arith.mulf %70, %70 : vector<1x32xf32>
      %cst_56 = arith.constant 1.250000e-01 : f32
      %73 = vector.broadcast %cst_56 : f32 to vector<1x32xf32>
      %74 = arith.mulf %72, %73 : vector<1x32xf32>
      %75 = arith.subf %71, %74 : vector<1x32xf32>
      %cst_57 = arith.constant 0.000000e+00 : f32
      %76 = vector.broadcast %cst_57 : f32 to vector<1x32xf32>
      %77 = arith.maximumf %75, %76 : vector<1x32xf32>
      %cst_58 = arith.constant 1.250000e-01 : f32
      %78 = vector.broadcast %cst_58 : f32 to vector<1x32xf32>
      %79 = arith.mulf %77, %78 : vector<1x32xf32>
      %cst_59 = arith.constant 9.99999974E-5 : f32
      %80 = vector.broadcast %cst_59 : f32 to vector<1x32xf32>
      %81 = arith.addf %79, %80 : vector<1x32xf32>
      %82 = math.sqrt %81 : vector<1x32xf32>
      %cst_60 = arith.constant 1.000000e+00 : f32
      %83 = vector.broadcast %cst_60 : f32 to vector<1x32xf32>
      %84 = arith.subf %83, %82 : vector<1x32xf32>
      %cst_61 = arith.constant 0.000000e+00 : f32
      %85 = vector.broadcast %cst_61 : f32 to vector<1x32xf32>
      %86 = arith.maximumf %84, %85 : vector<1x32xf32>
      %87 = vector.shape_cast %86 : vector<1x32xf32> to vector<1x1x32xf32>
      %cst_62 = arith.constant dense<0.000000e+00> : vector<1xf32>
      %88 = vector.multi_reduction <add>, %87, %cst_62 [1, 2] : vector<1x1x32xf32> to vector<1xf32>
      %89 = vector.shape_cast %88 : vector<1xf32> to vector<1x1x1xf32>
      %90 = vector.extract %89[0, 0, 0] : f32 from vector<1x1x1xf32>
      %cst_63 = arith.constant 3.125000e-02 : f32
      %91 = arith.mulf %90, %cst_63 : f32
      %92 = arith.addf %69, %91 : f32
      %c0_64 = arith.constant 0 : index
      %c0_65 = arith.constant 0 : index
      %93 = vector.load %arg5[%c0_64, %c0_65] : memref<1x32xf32, #tpu.memory_space<vmem>>, vector<1x32xf32>
      %c0_66 = arith.constant 0 : index
      %c0_67 = arith.constant 0 : index
      %94 = vector.load %arg9[%c0_66, %c0_67] : memref<32x32xf32, #tpu.memory_space<vmem>>, vector<32x32xf32>
      %95 = arith.mulf %94, %94 : vector<32x32xf32>
      %96 = vector.shape_cast %95 : vector<32x32xf32> to vector<1x32x32xf32>
      %cst_68 = arith.constant dense<0.000000e+00> : vector<1xf32>
      %97 = vector.multi_reduction <add>, %96, %cst_68 [1, 2] : vector<1x32x32xf32> to vector<1xf32>
      %98 = vector.shape_cast %97 : vector<1xf32> to vector<1x1x1xf32>
      %99 = vector.extract %98[0, 0, 0] : f32 from vector<1x1x1xf32>
      %cst_69 = arith.constant dense<0.000000e+00> : vector<1x32xf32>
      %100 = tpu.matmul %93, %94, %cst_69 {dimension_numbers = #tpu.dot_dimension_numbers<[1], [0], [0], [1], [0, 0, 1, 1], [], []>} : vector<1x32xf32>, vector<32x32xf32>, vector<1x32xf32> -> vector<1x32xf32>
      %101 = arith.mulf %100, %93 : vector<1x32xf32>
      %102 = vector.shape_cast %101 : vector<1x32xf32> to vector<1x1x32xf32>
      %cst_70 = arith.constant dense<0.000000e+00> : vector<1xf32>
      %103 = vector.multi_reduction <add>, %102, %cst_70 [1, 2] : vector<1x1x32xf32> to vector<1xf32>
      %104 = vector.shape_cast %103 : vector<1xf32> to vector<1x1x1xf32>
      %105 = vector.extract %104[0, 0, 0] : f32 from vector<1x1x1xf32>
      %106 = arith.mulf %93, %93 : vector<1x32xf32>
      %107 = vector.shape_cast %106 : vector<1x32xf32> to vector<1x1x32xf32>
      %cst_71 = arith.constant dense<0.000000e+00> : vector<1xf32>
      %108 = vector.multi_reduction <add>, %107, %cst_71 [1, 2] : vector<1x1x32xf32> to vector<1xf32>
      %109 = vector.shape_cast %108 : vector<1xf32> to vector<1x1x1xf32>
      %110 = vector.extract %109[0, 0, 0] : f32 from vector<1x1x1xf32>
      %cst_72 = arith.constant 2.500000e-01 : f32
      %111 = arith.mulf %cst_72, %105 : f32
      %112 = arith.subf %99, %111 : f32
      %113 = arith.mulf %110, %110 : f32
      %cst_73 = arith.constant 1.562500e-02 : f32
      %114 = arith.mulf %113, %cst_73 : f32
      %115 = arith.addf %112, %114 : f32
      %cst_74 = arith.constant 0.000000e+00 : f32
      %116 = vector.broadcast %cst_74 : f32 to vector<32x32xf32>
      %117 = arith.select %47, %94, %116 : vector<32x32xi1>, vector<32x32xf32>
      %cst_75 = arith.constant dense<0.000000e+00> : vector<32xf32>
      %118 = vector.multi_reduction <add>, %117, %cst_75 [0] : vector<32x32xf32> to vector<32xf32>
      %119 = vector.shape_cast %118 : vector<32xf32> to vector<1x32xf32>
      %120 = arith.mulf %93, %93 : vector<1x32xf32>
      %cst_76 = arith.constant 1.250000e-01 : f32
      %121 = vector.broadcast %cst_76 : f32 to vector<1x32xf32>
      %122 = arith.mulf %120, %121 : vector<1x32xf32>
      %123 = arith.subf %119, %122 : vector<1x32xf32>
      %124 = arith.mulf %123, %123 : vector<1x32xf32>
      %125 = vector.shape_cast %124 : vector<1x32xf32> to vector<1x1x32xf32>
      %cst_77 = arith.constant dense<0.000000e+00> : vector<1xf32>
      %126 = vector.multi_reduction <add>, %125, %cst_77 [1, 2] : vector<1x1x32xf32> to vector<1xf32>
      %127 = vector.shape_cast %126 : vector<1xf32> to vector<1x1x1xf32>
      %128 = vector.extract %127[0, 0, 0] : f32 from vector<1x1x1xf32>
      %129 = arith.subf %115, %128 : f32
      %c0_78 = arith.constant 0 : index
      %c0_79 = arith.constant 0 : index
      %130 = vector.load %arg6[%c0_78, %c0_79] : memref<1x32xf32, #tpu.memory_space<vmem>>, vector<1x32xf32>
      %c0_80 = arith.constant 0 : index
      %c0_81 = arith.constant 0 : index
      %131 = vector.load %arg10[%c0_80, %c0_81] : memref<32x32xf32, #tpu.memory_space<vmem>>, vector<32x32xf32>
      %132 = arith.mulf %131, %131 : vector<32x32xf32>
      %133 = vector.shape_cast %132 : vector<32x32xf32> to vector<1x32x32xf32>
      %cst_82 = arith.constant dense<0.000000e+00> : vector<1xf32>
      %134 = vector.multi_reduction <add>, %133, %cst_82 [1, 2] : vector<1x32x32xf32> to vector<1xf32>
      %135 = vector.shape_cast %134 : vector<1xf32> to vector<1x1x1xf32>
      %136 = vector.extract %135[0, 0, 0] : f32 from vector<1x1x1xf32>
      %cst_83 = arith.constant dense<0.000000e+00> : vector<1x32xf32>
      %137 = tpu.matmul %130, %131, %cst_83 {dimension_numbers = #tpu.dot_dimension_numbers<[1], [0], [0], [1], [0, 0, 1, 1], [], []>} : vector<1x32xf32>, vector<32x32xf32>, vector<1x32xf32> -> vector<1x32xf32>
      %138 = arith.mulf %137, %130 : vector<1x32xf32>
      %139 = vector.shape_cast %138 : vector<1x32xf32> to vector<1x1x32xf32>
      %cst_84 = arith.constant dense<0.000000e+00> : vector<1xf32>
      %140 = vector.multi_reduction <add>, %139, %cst_84 [1, 2] : vector<1x1x32xf32> to vector<1xf32>
      %141 = vector.shape_cast %140 : vector<1xf32> to vector<1x1x1xf32>
      %142 = vector.extract %141[0, 0, 0] : f32 from vector<1x1x1xf32>
      %143 = arith.mulf %130, %130 : vector<1x32xf32>
      %144 = vector.shape_cast %143 : vector<1x32xf32> to vector<1x1x32xf32>
      %cst_85 = arith.constant dense<0.000000e+00> : vector<1xf32>
      %145 = vector.multi_reduction <add>, %144, %cst_85 [1, 2] : vector<1x1x32xf32> to vector<1xf32>
      %146 = vector.shape_cast %145 : vector<1xf32> to vector<1x1x1xf32>
      %147 = vector.extract %146[0, 0, 0] : f32 from vector<1x1x1xf32>
      %cst_86 = arith.constant 2.500000e-01 : f32
      %148 = arith.mulf %cst_86, %142 : f32
      %149 = arith.subf %136, %148 : f32
      %150 = arith.mulf %147, %147 : f32
      %cst_87 = arith.constant 1.562500e-02 : f32
      %151 = arith.mulf %150, %cst_87 : f32
      %152 = arith.addf %149, %151 : f32
      %cst_88 = arith.constant 0.000000e+00 : f32
      %153 = vector.broadcast %cst_88 : f32 to vector<32x32xf32>
      %154 = arith.select %47, %131, %153 : vector<32x32xi1>, vector<32x32xf32>
      %cst_89 = arith.constant dense<0.000000e+00> : vector<32xf32>
      %155 = vector.multi_reduction <add>, %154, %cst_89 [0] : vector<32x32xf32> to vector<32xf32>
      %156 = vector.shape_cast %155 : vector<32xf32> to vector<1x32xf32>
      %157 = arith.mulf %130, %130 : vector<1x32xf32>
      %cst_90 = arith.constant 1.250000e-01 : f32
      %158 = vector.broadcast %cst_90 : f32 to vector<1x32xf32>
      %159 = arith.mulf %157, %158 : vector<1x32xf32>
      %160 = arith.subf %156, %159 : vector<1x32xf32>
      %161 = arith.mulf %160, %160 : vector<1x32xf32>
      %162 = vector.shape_cast %161 : vector<1x32xf32> to vector<1x1x32xf32>
      %cst_91 = arith.constant dense<0.000000e+00> : vector<1xf32>
      %163 = vector.multi_reduction <add>, %162, %cst_91 [1, 2] : vector<1x1x32xf32> to vector<1xf32>
      %164 = vector.shape_cast %163 : vector<1xf32> to vector<1x1x1xf32>
      %165 = vector.extract %164[0, 0, 0] : f32 from vector<1x1x1xf32>
      %166 = arith.subf %152, %165 : f32
      %167 = arith.addf %129, %166 : f32
      %c0_92 = arith.constant 0 : index
      %c0_93 = arith.constant 0 : index
      %168 = vector.load %arg4[%c0_92, %c0_93] : memref<1x32xf32, #tpu.memory_space<vmem>>, vector<1x32xf32>
      %169 = vector.shape_cast %168 : vector<1x32xf32> to vector<1x1x32xf32>
      %cst_94 = arith.constant dense<0.000000e+00> : vector<1xf32>
      %170 = vector.multi_reduction <add>, %169, %cst_94 [1, 2] : vector<1x1x32xf32> to vector<1xf32>
      %171 = vector.shape_cast %170 : vector<1xf32> to vector<1x1x1xf32>
      %172 = vector.extract %171[0, 0, 0] : f32 from vector<1x1x1xf32>
      %cst_95 = arith.constant 3.906250e-03 : f32
      %173 = arith.mulf %172, %cst_95 : f32
      %cst_96 = arith.constant 6.37755089E-4 : f32
      %174 = arith.mulf %167, %cst_96 : f32
      %cst_97 = arith.constant 2.500000e+01 : f32
      %175 = arith.mulf %cst_97, %173 : f32
      %cst_98 = arith.constant 2.500000e+01 : f32
      %176 = arith.mulf %cst_98, %92 : f32
      %177 = arith.addf %175, %176 : f32
      %cst_99 = arith.constant 1.000000e+00 : f32
      %178 = arith.mulf %cst_99, %174 : f32
      %179 = arith.addf %177, %178 : f32
      %c0_100 = arith.constant 0 : index
      %c0_101 = arith.constant 0 : index
      %180 = memref.load %arg3[%c0_100, %c0_101] : memref<1x1xf32, #tpu.memory_space<smem>>
      memref.store %179, %arg3[%c0_100, %c0_101] : memref<1x1xf32, #tpu.memory_space<smem>>
    } else {
    }
    return
  }
  func.func @transform_0(%arg0: i32) -> (i32, i32) {
    %c0_i32 = arith.constant 0 : i32
    %c0_i32_0 = arith.constant 0 : i32
    return %arg0, %c0_i32 : i32, i32
  }
  func.func @transform_1(%arg0: i32) -> (i32, i32) {
    %c0_i32 = arith.constant 0 : i32
    %c0_i32_0 = arith.constant 0 : i32
    return %arg0, %c0_i32 : i32, i32
  }
  func.func @transform_2(%arg0: i32) -> (i32, i32) {
    %c0_i32 = arith.constant 0 : i32
    %c0_i32_0 = arith.constant 0 : i32
    %c0_i32_1 = arith.constant 0 : i32
    return %c0_i32, %c0_i32_0 : i32, i32
  }
}

</mosaic_0001>

<bundles_post_ra>
// kernel: tpu_custom_call.1
= control target key start
LH: loop header
LB: loop body
LE: loop exit
PB: predicated region body
PF: predicated region fallthrough
CT: control target
= control target key end

     0   :  { %7 = vsyncpa [#allocation10], 0  ;;  %s1152_s0 = inlined_call_operand.hbm [shape: f32[8,32], index: 0, kind: input, shape index: {}]   ;;  %s1153_s1 = inlined_call_operand.hbm [shape: f32[8,32], index: 1, kind: input, shape index: {}]   ;;  %s1154_s2 = inlined_call_operand.hbm [shape: f32[1,1], index: 2, kind: output, shape index: {}]  }
   0x1   :  { %8 = vsyncpa [#allocation13], 0 }
   0x2   :  { %9 = vsyncpa [#allocation11], 0  ;;  %s961_s9 = smov [#allocation9]   ;;  %s962_s11 = smov [#allocation12]  }
   0x3   :  { %s16_s10 = sshll.u32 %s961_s9, 4  ;;  %s26_s12 = sshll.u32 %s962_s11, 4  ;;  %s17_s10 = int_to_ptr.vmem [resolvable:$true] %s16_s10  ;;  %s27_s12 = int_to_ptr.vmem [resolvable:$true] %s26_s12 }
   0x4   :  { %s915_s13 = scalar_lea.vmem %s17_s10, 128  ;;  %p920_p1 = scmp.lt.s32.totalorder %s17_s10, %s17_s10 }
   0x5   :  { %p916_p0 = scmp.ne.s32.totalorder %s17_s10, %s915_s13  ;;  %p921_p2 = scmp.lt.s32.totalorder %s915_s13, %s915_s13 }
   0x7   :  { %p922_p3 = por %p921_p2, %p920_p1 }
   0x9   :  { %p923_p4 = pnand %p922_p3, %p916_p0 }
   0xb   :  { %926 = shalt.err (!%p923_p4)
}
   0xc   :  { %19 = dma.hbm_to_vmem [thread:$0]  %s1152_s0, 128, %s17_s10, [#allocation10]  }
   0xd   :  { %s935_s16 = scalar_lea.vmem %s27_s12, 128  ;;  %p940_p6 = scmp.lt.s32.totalorder %s27_s12, %s27_s12 }
   0xe   :  { %p936_p5 = scmp.ne.s32.totalorder %s27_s12, %s935_s16  ;;  %p941_p7 = scmp.lt.s32.totalorder %s935_s16, %s935_s16 }
  0x10   :  { %p942_p8 = por %p941_p7, %p940_p6 }
  0x12   :  { %p943_p9 = pnand %p942_p8, %p936_p5 }
  0x14   :  { %946 = shalt.err (!%p943_p9)
}
  0x15   :  { %29 = dma.hbm_to_vmem [thread:$0]  %s1153_s1, 128, %s27_s12, [#allocation13]  }
  0x16   :  { %955 = dma.done.wait [#allocation10], 128  }
  0x17   :  { %956 = vsyncadd [#allocation10], 4294967168 }
  0x18   :  { %957 = dma.done.wait [#allocation13], 128  }
  0x19   :  { %958 = vsyncadd [#allocation13], 4294967168  ;;  %vm40_vm0 = vcmask 253952   ;;  %vm46_vm1 = vcmask 261120   ;;  %v963_v0 = vmov 0.0   ;;  %v55_v1 = vld [vmem:[#allocation9] sm:$0xff] }
  0x1a   :  { %42 = vst.msk [vmem:[#allocation3] sm:$0x1] %vm40_vm0, %v963_v0  ;;  %44 = vst.msk [vmem:[#allocation5] sm:$0x1] %vm40_vm0, %v963_v0  ;;  %v56_v2 = vld [vmem:[#allocation12] sm:$0xff]  ;;  %117 = vxpose.xlu0.b32.start.end [1/1] (short) (narrow) %v55_v1, 32  ;;  %v92_v4 = vmul.f32 %v55_v1, %v55_v1  ;;  %838 = vmatprep.subr.mxu0 %v55_v1 }
  0x1b   :  { %41 = vst.msk [vmem:[#allocation2] sm:$0x1] %vm40_vm0, %v963_v0  ;;  %43 = vst.msk [vmem:[#allocation4] sm:$0x1] %vm40_vm0, %v963_v0  ;;  %v72_v3 = vsel %vm46_vm1, %v55_v1, 0.0  ;;  %v103_v5 = vmul.f32 %v56_v2, %v56_v2  ;;  %v57_v6 = vsub.f32 %v55_v1, %v56_v2  ;;  %v82_v8 = vsel %vm46_vm1, %v56_v2, 0.0  ;;  %839 = vmatpush3.msra.mxu0 %v55_v1 }
  0x1c   :  { %45 = vst.msk [vmem:[#allocation6] sm:$0x1] %vm40_vm0, %v963_v0  ;;  %v73_v7 = vrot.slane %v72_v3, 4  ;;  %846 = vmatprep.subr.mxu1 %v56_v2  ;;  %v93_v9 = vsel %vm46_vm1, %v92_v4, 0.0  ;;  %v83_v10 = vrot.slane %v82_v8, 4  ;;  %854 = vmatprep.subr.mxu0 %v963_v0  ;;  %vm149_vm2 = vcmask 64512  }
  0x1d   :  { %47 = vst.msk [vmem:[#allocation7] sm:$0xff] %vm46_vm1, %v963_v0  ;;  %48 = vst.msk [vmem:[#allocation7 + $0x8] sm:$0xff] %vm46_vm1, %v963_v0  ;;  %v104_v11 = vsel %vm46_vm1, %v103_v5, 0.0  ;;  %v59_v12 = vmul.f32 %v57_v6, %v57_v6  ;;  %847 = vmatpush3.msra.mxu1 %v56_v2  ;;  %v94_v14 = vrot.slane %v93_v9, 4  ;;  %vm964_vm7 = vmmov 0  }
  0x1e   :  { %49 = vst.msk [vmem:[#allocation7 + $0x10] sm:$0xff] %vm46_vm1, %v963_v0  ;;  %50 = vst.msk [vmem:[#allocation7 + $0x18] sm:$0xff] %vm46_vm1, %v963_v0  ;;  %v74_v13 = vadd.f32 %v73_v7, %v72_v3  ;;  %v105_v15 = vrot.slane %v104_v11, 4  ;;  %865 = vmatprep.subr.mxu1 %v963_v0  ;;  %v84_v16 = vadd.f32 %v83_v10, %v82_v8 }
  0x1f   :  { %51 = vst.msk [vmem:[#allocation8] sm:$0xff] %vm46_vm1, %v963_v0  ;;  %52 = vst.msk [vmem:[#allocation8 + $0x8] sm:$0xff] %vm46_vm1, %v963_v0  ;;  %v61_v17 = vsel %vm46_vm1, %v59_v12, 0.0  ;;  %v95_v19 = vadd.f32 %v94_v14, %v93_v9 }
  0x20   :  { %53 = vst.msk [vmem:[#allocation8 + $0x10] sm:$0xff] %vm46_vm1, %v963_v0  ;;  %54 = vst.msk [vmem:[#allocation8 + $0x18] sm:$0xff] %vm46_vm1, %v963_v0  ;;  %v75_v18 = vrot.slane %v74_v13, 2  ;;  %v106_v20 = vadd.f32 %v105_v15, %v104_v11  ;;  %v62_v21 = vrot.slane %v61_v17, 4  ;;  %v85_v22 = vrot.slane %v84_v16, 2 }
  0x21   :  { %v96_v24 = vrot.slane %v95_v19, 2  ;;  %v71_v32 = vld [vmem:[#allocation3] sm:$0x1]  ;;  %v91_v39 = vld [vmem:[#allocation5] sm:$0x1] }
  0x22   :  { %v76_v23 = vadd.f32 %v75_v18, %v74_v13  ;;  %v107_v25 = vrot.slane %v106_v20, 2  ;;  %v63_v26 = vadd.f32 %v62_v21, %v61_v17  ;;  %v86_v27 = vadd.f32 %v85_v22, %v84_v16  ;;  %v81_v38 = vld [vmem:[#allocation4] sm:$0x1]  ;;  %v58_v46 = vld [vmem:[#allocation2] sm:$0x1] }
  0x23   :  { %v97_v29 = vadd.f32 %v96_v24, %v95_v19  ;;  %v102_v41 = vld [vmem:[#allocation6] sm:$0x1] }
  0x24   :  { %v77_v28 = vrot.slane %v76_v23, 1  ;;  %v108_v30 = vadd.f32 %v107_v25, %v106_v20  ;;  %v64_v31 = vrot.slane %v63_v26, 2  ;;  %v87_v33 = vrot.slane %v86_v27, 1 }
  0x25   :  { %v98_v35 = vrot.slane %v97_v29, 1 }
  0x26   :  { %v78_v34 = vadd.f32 %v77_v28, %v76_v23  ;;  %v109_v36 = vrot.slane %v108_v30, 1  ;;  %v65_v37 = vadd.f32 %v64_v31, %v63_v26  ;;  %v88_v40 = vadd.f32 %v87_v33, %v86_v27 }
  0x27   :  { %v99_v43 = vadd.f32 %v98_v35, %v97_v29  ;;  %259 = vxpose.xlu0.b32.start.end [1/1] (short) (narrow) %v56_v2, 32 }
  0x28   :  { %v79_v42 = vadd.f32 %v78_v34, %v71_v32  ;;  %v110_v44 = vadd.f32 %v109_v36, %v108_v30  ;;  %v66_v45 = vrot.slane %v65_v37, 1  ;;  %v89_v47 = vadd.f32 %v88_v40, %v81_v38  ;;  %v114_v30 = vld [vmem:[#allocation7 + $0x8] sm:$0xff]  ;;  %v113_v32 = vld [vmem:[#allocation7] sm:$0xff]  ;;  %v116_v38 = vld [vmem:[#allocation7 + $0x18] sm:$0xff] }
  0x29   :  { %v100_v48 = vadd.f32 %v99_v43, %v91_v39  ;;  %v399_v34 = vlaneseq  ;;  %v115_v40 = vld [vmem:[#allocation7 + $0x10] sm:$0xff] }
  0x2a   :  { %80 = vst.msk [vmem:[#allocation3] sm:$0x1] %vm40_vm0, %v79_v42  ;;  %v67_v49 = vadd.f32 %v66_v45, %v65_v37  ;;  %v111_v50 = vadd.f32 %v110_v44, %v102_v41  ;;  %90 = vst.msk [vmem:[#allocation4] sm:$0x1] %vm40_vm0, %v89_v47 }
  0x2b   :  { %101 = vst.msk [vmem:[#allocation5] sm:$0x1] %vm40_vm0, %v100_v48  ;;  %v1057_v37 = vshrl.u32 %v399_v34, 7  ;;  %v1059_v42 = vand.u32 127, %v399_v34  ;;  %v256_v48 = vld [vmem:[#allocation8 + $0x8] sm:$0xff] }
  0x2c   :  { %v68_v51 = vadd.f32 %v67_v49, %v58_v46  ;;  %112 = vst.msk [vmem:[#allocation6] sm:$0x1] %vm40_vm0, %v111_v50 }
  0x2d   :  { %v1062_v43 = vadd.s32 8, %v1057_v37  ;;  %vm406_vm8 = vcmp.eq.s32.totalorder %v1057_v37, %v1059_v42  ;;  %v1071_v49 = vadd.s32 24, %v1057_v37  ;;  %v1074_v50 = vadd.s32 16, %v1057_v37 }
  0x2e   :  { %70 = vst.msk [vmem:[#allocation2] sm:$0x1] %vm40_vm0, %v68_v51 }
  0x2f   :  { %vm407_vm9 = vcmp.eq.s32.totalorder %v1062_v43, %v1059_v42  ;;  %vm409_vm10 = vcmp.eq.s32.totalorder %v1071_v49, %v1059_v42  ;;  %vm408_vm11 = vcmp.eq.s32.totalorder %v1074_v50, %v1059_v42 }
  0x31   :  { %v1033_v60 = vld [vmem:[#allocation3] sm:$0x1]  ;;  %v1039_v1 = vld [vmem:[#allocation4] sm:$0x1] }
  0x32   :  { %v412_v61 = vmul.f32 %v1033_v60, %v1033_v60  ;;  %v411_v63 = vld [vmem:[#allocation5] sm:$0x1]  ;;  %v1044_v3 = vmul.f32 %v1039_v1, %v1039_v1 }
  0x33   :  { %v439_v6 = vld [vmem:[#allocation6] sm:$0x1] }
  0x34   :  { %v1037_v62 = vmul.f32 0.125, %v412_v61  ;;  %v1047_v5 = vmul.f32 0.125, %v1044_v3  ;;  %v575_v19 = vsel %vm40_vm0, %v412_v61, 0.0 }
  0x35   :  { %576 = vadd.xlane.f32.xlu1 %v575_v19 }
  0x36   :  { %v414_v2 = vsub.f32 %v411_v63, %v1037_v62  ;;  %v442_v8 = vsub.f32 %v439_v6, %v1047_v5 }
  0x38   :  { %v415_v4 = vmax.f32 %v414_v2, 0.0  ;;  %v443_v10 = vmax.f32 %v442_v8, 0.0 }
  0x3a   :  { %v416_v7 = vmul.f32 0.125, %v415_v4  ;;  %v444_v11 = vmul.f32 0.125, %v443_v10 }
  0x3c   :  { %v417_v9 = vadd.f32 0.0001, %v416_v7  ;;  %v445_v12 = vadd.f32 0.0001, %v444_v11 }
  0x3e   :  { %903 = vrsqrt.f32 %v417_v9  ;;  %vm420_vm3 = vcmp.eq.f32.partialorder %v417_v9, inf  ;;  %v423_v15 = vand.u32 2147483648, %v417_v9  ;;  %vm422_vm4 = vcmp.eq.f32.partialorder %v417_v9, 0.0 }
  0x3f   :  { %905 = vrsqrt.f32 %v445_v12  ;;  %vm448_vm5 = vcmp.eq.f32.partialorder %v445_v12, inf  ;;  %v451_v22 = vand.u32 2147483648, %v445_v12  ;;  %vm450_vm6 = vcmp.eq.f32.partialorder %v445_v12, 0.0 }
  0x4b   :  { %v904_v13 = vpop.eup %903 }
  0x4c   :  { %v419_v14 = vmul.f32 %v904_v13, %v417_v9  ;;  %v906_v17 = vpop.eup %905 }
  0x4d   :  { %v447_v21 = vmul.f32 %v906_v17, %v445_v12 }
  0x4e   :  { %v421_v16 = vsel %vm420_vm3, %v417_v9, %v419_v14  ;;  %v258_v14 = vld [vmem:[#allocation8 + $0x18] sm:$0xff] }
  0x4f   :  { %v424_v18 = vsel %vm422_vm4, %v423_v15, %v421_v16  ;;  %v449_v24 = vsel %vm448_vm5, %v445_v12, %v447_v21 }
  0x50   :  { %v425_v20 = vsub.f32 1.0, %v424_v18  ;;  %v452_v25 = vsel %vm450_vm6, %v451_v22, %v449_v24 }
  0x51   :  { %v453_v27 = vsub.f32 1.0, %v452_v25 }
  0x52   :  { %v426_v23 = vmax.f32 %v425_v20, 0.0  ;;  %v257_v20 = vld [vmem:[#allocation8 + $0x10] sm:$0xff] }
  0x53   :  { %v454_v28 = vmax.f32 %v453_v27, 0.0 }
  0x54   :  { %v427_v26 = vsel %vm40_vm0, %v426_v23, 0.0 }
  0x55   :  { %428 = vadd.xlane.f32.xlu1 %v427_v26  ;;  %v455_v29 = vsel %vm40_vm0, %v454_v28, 0.0 }
  0x59   :  { %456 = vadd.xlane.f32.xlu1 %v455_v29 }
  0x96   :  { %v133_v52 = vpop.trf.xlu0 }
  0x97   :  { %840 = vmatprep.mubr.msk.f32.mxu0 %vm149_vm2, %v133_v52 }
  0x9a   :  { %v134_v53 = vpop.trf.xlu0 }
  0x9b   :  { %841 = vmatmul.mubr.msk.f32.vlgmr.msra.gmra.mxu0 %vm149_vm2, %v134_v53 }
  0x9e   :  { %v135_v54 = vpop.trf.xlu0 }
  0x9f   :  { %843 = vmatprep.mubr.msk.f32.mxu0 %vm149_vm2, %v135_v54  ;;  %v255_v54 = vld [vmem:[#allocation8] sm:$0xff] }
  0xa2   :  { %v136_v55 = vpop.trf.xlu0 }
  0xa3   :  { %844 = vmatmul.mubr.msk.f32.gmra.mxu0 %vm149_vm2, %v136_v55 }
  0xa4   :  { %862 = vmatprep.mubr.msk.f32.mxu0 %vm964_vm7, %v963_v0 }
  0xa6   :  { %v275_v56 = vpop.trf.xlu0 }
  0xa7   :  { %848 = vmatprep.mubr.msk.f32.mxu1 %vm149_vm2, %v275_v56 }
  0xaa   :  { %v276_v57 = vpop.trf.xlu0 }
  0xab   :  { %849 = vmatmul.mubr.msk.f32.vlgmr.msra.gmra.mxu1 %vm149_vm2, %v276_v57 }
  0xae   :  { %v277_v58 = vpop.trf.xlu0 }
  0xaf   :  { %851 = vmatprep.mubr.msk.f32.mxu1 %vm149_vm2, %v277_v58 }
  0xb2   :  { %v278_v59 = vpop.trf.xlu0 }
  0xb3   :  { %852 = vmatmul.mubr.msk.f32.gmra.mxu1 %vm149_vm2, %v278_v59 }
  0xb4   :  { %873 = vmatprep.mubr.msk.f32.mxu1 %vm964_vm7, %v963_v0 }
  0xbe   :  { %v1105_v25 = vpop.xlane.xlu1 %576 }
 0x15b   :  { %v842_v31 = vpop.f32.mrf.mxu0 }
 0x15c   :  { %v248_v33 = vadd.f32 %v842_v31, %v114_v30 }
 0x15d   :  { %v228_v35 = vpop.f32.mrf.mxu0 }
 0x15e   :  { %252 = vst.msk [vmem:[#allocation7 + $0x8] sm:$0xff] %vm46_vm1, %v248_v33  ;;  %v247_v36 = vadd.f32 %v228_v35, %v113_v32  ;;  %v429_v35 = vpop.xlane.xlu1 %428 }
 0x160   :  { %251 = vst.msk [vmem:[#allocation7] sm:$0xff] %vm46_vm1, %v247_v36 }
 0x163   :  { %v845_v39 = vpop.f32.mrf.mxu0 }
 0x164   :  { %v250_v41 = vadd.f32 %v845_v39, %v116_v38  ;;  %v430_v39 = vrot.slane %v429_v35, 4 }
 0x165   :  { %v238_v44 = vpop.f32.mrf.mxu0  ;;  %v468_v47 = vld [vmem:[#allocation7 + $0x8] sm:$0xff] }
 0x166   :  { %254 = vst.msk [vmem:[#allocation7 + $0x18] sm:$0xff] %vm46_vm1, %v250_v41  ;;  %v249_v45 = vadd.f32 %v238_v44, %v115_v40  ;;  %v472_v55 = vmul.f32 %v468_v47, %v468_v47  ;;  %v591_v56 = vsel %vm407_vm9, %v468_v47, 0.0 }
 0x167   :  { %v467_v46 = vld [vmem:[#allocation7] sm:$0xff]  ;;  %v595_v2 = vsel %vm46_vm1, %v591_v56, 0.0 }
 0x168   :  { %253 = vst.msk [vmem:[#allocation7 + $0x10] sm:$0xff] %vm46_vm1, %v249_v45  ;;  %v590_v51 = vsel %vm406_vm8, %v467_v46, 0.0  ;;  %v471_v52 = vmul.f32 %v467_v46, %v467_v46  ;;  %v476_v8 = vsel %vm46_vm1, %v472_v55, 0.0 }
 0x169   :  { %v594_v58 = vsel %vm46_vm1, %v590_v51, 0.0 }
 0x16a   :  { %v475_v4 = vsel %vm46_vm1, %v471_v52, 0.0  ;;  %v596_v7 = vadd.f32 %v595_v2, %v594_v58 }
 0x16b   :  { %v850_v53 = vpop.f32.mrf.mxu1  ;;  %v477_v15 = vadd.f32 %v476_v8, %v475_v4 }
 0x16c   :  { %v389_v57 = vadd.f32 %v850_v53, %v256_v48  ;;  %v431_v48 = vadd.f32 %v430_v39, %v429_v35 }
 0x16d   :  { %v369_v59 = vpop.f32.mrf.mxu1  ;;  %v470_v61 = vld [vmem:[#allocation7 + $0x18] sm:$0xff] }
 0x16e   :  { %393 = vst.msk [vmem:[#allocation8 + $0x8] sm:$0xff] %vm46_vm1, %v389_v57  ;;  %v388_v63 = vadd.f32 %v369_v59, %v255_v54  ;;  %855 = vmatpush3.msra.mxu0 %v470_v61  ;;  %v593_v9 = vsel %vm409_vm10, %v470_v61, 0.0  ;;  %v474_v12 = vmul.f32 %v470_v61, %v470_v61  ;;  %v432_v2 = vrot.slane %v431_v48, 2 }
 0x16f   :  { %856 = vmatprep.subr.mxu0 %v963_v0  ;;  %v469_v6 = vld [vmem:[#allocation7 + $0x10] sm:$0xff]  ;;  %v599_v18 = vsel %vm46_vm1, %v593_v9, 0.0 }
 0x170   :  { %392 = vst.msk [vmem:[#allocation8] sm:$0xff] %vm46_vm1, %v388_v63  ;;  %v473_v10 = vmul.f32 %v469_v6, %v469_v6  ;;  %857 = vmatpush3.msra.mxu0 %v469_v6  ;;  %v592_v11 = vsel %vm408_vm11, %v469_v6, 0.0  ;;  %v480_v23 = vsel %vm46_vm1, %v474_v12, 0.0 }
 0x171   :  { %v597_v13 = vsel %vm46_vm1, %v592_v11, 0.0  ;;  %858 = vmatprep.subr.mxu0 %v963_v0 }
 0x172   :  { %859 = vmatpush3.msra.mxu0 %v468_v47  ;;  %v598_v16 = vadd.f32 %v597_v13, %v596_v7  ;;  %v478_v17 = vsel %vm46_vm1, %v473_v10, 0.0  ;;  %v433_v13 = vadd.f32 %v432_v2, %v431_v48  ;;  %v578_v48 = vrot.slane %v1105_v25, 4 }
 0x173   :  { %v853_v19 = vpop.f32.mrf.mxu1  ;;  %860 = vmatprep.subr.mxu0 %v963_v0  ;;  %v479_v21 = vadd.f32 %v478_v17, %v477_v15 }
 0x174   :  { %v391_v22 = vadd.f32 %v853_v19, %v258_v14  ;;  %861 = vmatpush3.msra.mxu0 %v467_v46  ;;  %v600_v24 = vadd.f32 %v599_v18, %v598_v16  ;;  %v457_v46 = vpop.xlane.xlu1 %456  ;;  %v434_v15 = vrot.slane %v433_v13, 1  ;;  %v728_v18 = vsel %vm40_vm0, %v1044_v3, 0.0 }
 0x175   :  { %v379_v26 = vpop.f32.mrf.mxu1  ;;  %863 = vmatmul.mubr.msk.f32.vlgmr.msra.gmra.mxu0 %vm46_vm1, %v1033_v60  ;;  %v481_v27 = vadd.f32 %v480_v23, %v479_v21  ;;  %v621_v28 = vld [vmem:[#allocation8 + $0x8] sm:$0xff]  ;;  %v458_v51 = vrot.slane %v457_v46, 4 }
 0x176   :  { %395 = vst.msk [vmem:[#allocation8 + $0x18] sm:$0xff] %vm46_vm1, %v391_v22  ;;  %v390_v29 = vadd.f32 %v379_v26, %v257_v20  ;;  %v744_v30 = vsel %vm407_vm9, %v621_v28, 0.0  ;;  %v601_v31 = vrot.slane %v600_v24, 4  ;;  %v625_v44 = vmul.f32 %v621_v28, %v621_v28 }
 0x177   :  { %482 = vadd.xlane.f32.xlu1 %v481_v27  ;;  %v620_v32 = vld [vmem:[#allocation8] sm:$0xff]  ;;  %v748_v36 = vsel %vm46_vm1, %v744_v30, 0.0  ;;  %v459_v56 = vadd.f32 %v458_v51, %v457_v46  ;;  %v435_v17 = vadd.f32 %v434_v15, %v433_v13 }
 0x178   :  { %394 = vst.msk [vmem:[#allocation8 + $0x10] sm:$0xff] %vm46_vm1, %v390_v29  ;;  %v743_v33 = vsel %vm406_vm8, %v620_v32, 0.0  ;;  %v602_v34 = vadd.f32 %v601_v31, %v600_v24  ;;  %v624_v40 = vmul.f32 %v620_v32, %v620_v32  ;;  %v629_v55 = vsel %vm46_vm1, %v625_v44, 0.0  ;;  %v774_v44 = vld [vmem:[#allocation2] sm:$0x1] }
 0x179   :  { %v747_v38 = vsel %vm46_vm1, %v743_v33, 0.0  ;;  %v460_v4 = vrot.slane %v459_v56, 2  ;;  %876 = vpush %v435_v17 }
 0x17a   :  { %v749_v41 = vadd.f32 %v748_v36, %v747_v38  ;;  %v603_v43 = vrot.slane %v602_v34, 2  ;;  %v628_v53 = vsel %vm46_vm1, %v624_v40, 0.0 }
 0x17b   :  { %v630_v63 = vadd.f32 %v629_v55, %v628_v53  ;;  %v461_v14 = vadd.f32 %v460_v4, %v459_v56 }
 0x17c   :  { %v604_v45 = vadd.f32 %v603_v43, %v602_v34 }
 0x17d   :  { %v623_v47 = vld [vmem:[#allocation8 + $0x18] sm:$0xff]  ;;  %v462_v16 = vrot.slane %v461_v14, 1 }
 0x17e   :  { %866 = vmatpush3.msra.mxu1 %v623_v47  ;;  %v746_v37 = vsel %vm409_vm10, %v623_v47, 0.0  ;;  %v605_v52 = vrot.slane %v604_v45, 1  ;;  %v627_v61 = vmul.f32 %v623_v47, %v623_v47 }
 0x17f   :  { %867 = vmatprep.subr.mxu1 %v963_v0  ;;  %v622_v54 = vld [vmem:[#allocation8 + $0x10] sm:$0xff]  ;;  %v752_v9 = vsel %vm46_vm1, %v746_v37, 0.0 }
 0x180   :  { %v626_v57 = vmul.f32 %v622_v54, %v622_v54  ;;  %868 = vmatpush3.msra.mxu1 %v622_v54  ;;  %v745_v58 = vsel %vm408_vm11, %v622_v54, 0.0  ;;  %v606_v59 = vadd.f32 %v605_v52, %v604_v45  ;;  %v633_v10 = vsel %vm46_vm1, %v627_v61, 0.0 }
 0x181   :  { %v750_v49 = vsel %vm46_vm1, %v745_v58, 0.0  ;;  %869 = vmatprep.subr.mxu1 %v963_v0  ;;  %v775_v45 = vsel %vm40_vm0, %v774_v44, 0.0 }
 0x182   :  { %870 = vmatpush3.msra.mxu1 %v621_v28  ;;  %v751_v6 = vadd.f32 %v750_v49, %v749_v41  ;;  %v607_v7 = vsub.f32 %v606_v59, %v1037_v62  ;;  %v631_v8 = vsel %vm46_vm1, %v626_v57, 0.0 }
 0x183   :  { %871 = vmatprep.subr.mxu1 %v963_v0  ;;  %v632_v42 = vadd.f32 %v631_v8, %v630_v63  ;;  %v463_v0 = vadd.f32 %v462_v16, %v461_v14 }
 0x184   :  { %872 = vmatpush3.msra.mxu1 %v620_v32  ;;  %v608_v50 = vmul.f32 %v607_v7, %v607_v7  ;;  %v753_v11 = vadd.f32 %v752_v9, %v751_v6 }
 0x185   :  { %874 = vmatmul.mubr.msk.f32.vlgmr.msra.gmra.mxu1 %vm46_vm1, %v1039_v1  ;;  %v634_v12 = vadd.f32 %v633_v10, %v632_v42  ;;  %878 = vpush %v463_v0 }
 0x186   :  { %v609_v62 = vsel %vm40_vm0, %v608_v50, 0.0  ;;  %v754_v27 = vrot.slane %v753_v11, 4 }
 0x187   :  { %610 = vadd.xlane.f32.xlu0 %v609_v62  ;;  %635 = vadd.xlane.f32.xlu1 %v634_v12 }
 0x188   :  { %v755_v28 = vadd.f32 %v754_v27, %v753_v11 }
 0x18a   :  { %v756_v29 = vrot.slane %v755_v28, 2 }
 0x18b   :  { %729 = vadd.xlane.f32.xlu1 %v728_v18 }
 0x18c   :  { %v757_v34 = vadd.f32 %v756_v29, %v755_v28 }
 0x18e   :  { %v758_v3 = vrot.slane %v757_v34, 1 }
 0x190   :  { %v759_v35 = vadd.f32 %v758_v3, %v757_v34 }
 0x192   :  { %v760_v36 = vsub.f32 %v759_v35, %v1047_v5 }
 0x194   :  { %v761_v43 = vmul.f32 %v760_v36, %v760_v36 }
 0x1aa   :  { %s877_s0 = spop %876 }
 0x1ab   :  { %s437_s27 = smul.f32 0.03125, %s877_s0 }
 0x1b6   :  { %s879_s1 = spop %878 }
 0x1b7   :  { %s465_s29 = smul.f32 0.03125, %s879_s1 }
 0x1b9   :  { %s466_s9 = sadd.f32 %s465_s29, %s437_s27 }
 0x1bb   :  { %s788_s16 = smul.f32 25.0, %s466_s9 }
 0x200   :  { %v483_v19 = vpop.xlane.xlu1 %482 }
 0x201   :  { %v484_v20 = vrot.slane %v483_v19, 4 }
 0x203   :  { %v485_v21 = vadd.f32 %v484_v20, %v483_v19 }
 0x205   :  { %v486_v22 = vrot.slane %v485_v21, 2 }
 0x207   :  { %v487_v23 = vadd.f32 %v486_v22, %v485_v21 }
 0x209   :  { %v488_v24 = vrot.slane %v487_v23, 1 }
 0x20b   :  { %v489_v26 = vadd.f32 %v488_v24, %v487_v23 }
 0x20d   :  { %880 = vpush %v489_v26 }
 0x210   :  { %v611_v46 = vpop.xlane.xlu0 %610  ;;  %v636_v47 = vpop.xlane.xlu1 %635 }
 0x211   :  { %v612_v5 = vrot.slane %v611_v46, 4  ;;  %v637_v51 = vrot.slane %v636_v47, 4 }
 0x213   :  { %v613_v52 = vadd.f32 %v612_v5, %v611_v46  ;;  %v638_v53 = vadd.f32 %v637_v51, %v636_v47 }
 0x214   :  { %v730_v37 = vpop.xlane.xlu1 %729 }
 0x215   :  { %v614_v56 = vrot.slane %v613_v52, 2  ;;  %v639_v58 = vrot.slane %v638_v53, 2  ;;  %v731_v6 = vrot.slane %v730_v37, 4 }
 0x217   :  { %v615_v49 = vadd.f32 %v614_v56, %v613_v52  ;;  %v640_v2 = vadd.f32 %v639_v58, %v638_v53 }
 0x219   :  { %v616_v9 = vrot.slane %v615_v49, 1  ;;  %v641_v42 = vrot.slane %v640_v2, 1 }
 0x21b   :  { %v617_v11 = vadd.f32 %v616_v9, %v615_v49  ;;  %v642_v12 = vadd.f32 %v641_v42, %v640_v2 }
 0x235   :  { %v560_v30 = vpop.f32.mrf.mxu0 }
 0x236   :  { %v564_v31 = vmul.f32 %v560_v30, %v1033_v60  ;;  %v762_v60 = vsel %vm40_vm0, %v761_v43, 0.0 }
 0x237   :  { %v864_v32 = vpop.f32.mrf.mxu0 }
 0x238   :  { %v565_v33 = vsel %vm40_vm0, %v564_v31, 0.0 }
 0x239   :  { %566 = vadd.xlane.f32.xlu1 %v565_v33 }
 0x23e   :  { %s881_s19 = spop %880 }
 0x245   :  { %v713_v38 = vpop.f32.mrf.mxu1 }
 0x246   :  { %v717_v39 = vmul.f32 %v713_v38, %v1039_v1  ;;  %v579_v1 = vadd.f32 %v578_v48, %v1105_v25  ;;  %v732_v25 = vadd.f32 %v731_v6, %v730_v37 }
 0x247   :  { %v875_v40 = vpop.f32.mrf.mxu1 }
 0x248   :  { %v718_v41 = vsel %vm40_vm0, %v717_v39, 0.0  ;;  %v580_v54 = vrot.slane %v579_v1, 2  ;;  %v733_v13 = vrot.slane %v732_v25, 2 }
 0x249   :  { %719 = vadd.xlane.f32.xlu1 %v718_v41 }
 0x24a   :  { %v581_v61 = vadd.f32 %v580_v54, %v579_v1  ;;  %v734_v17 = vadd.f32 %v733_v13, %v732_v25 }
 0x24c   :  { %v582_v7 = vrot.slane %v581_v61, 1  ;;  %v735_v22 = vrot.slane %v734_v17, 1 }
 0x24d   :  { %763 = vadd.xlane.f32.xlu1 %v762_v60 }
 0x24e   :  { %v583_v10 = vadd.f32 %v582_v7, %v581_v61  ;;  %v736_v30 = vadd.f32 %v735_v22, %v734_v17 }
 0x251   :  { %776 = vadd.xlane.f32.xlu1 %v775_v45 }
 0x2c2   :  { %v567_v55 = vpop.xlane.xlu1 %566 }
 0x2c3   :  { %v568_v57 = vrot.slane %v567_v55, 4 }
 0x2c5   :  { %v569_v59 = vadd.f32 %v568_v57, %v567_v55 }
 0x2c7   :  { %v570_v63 = vrot.slane %v569_v59, 2 }
 0x2c9   :  { %v571_v4 = vadd.f32 %v570_v63, %v569_v59 }
 0x2cb   :  { %v572_v8 = vrot.slane %v571_v4, 1 }
 0x2cd   :  { %v573_v50 = vadd.f32 %v572_v8, %v571_v4 }
 0x2cf   :  { %882 = vpush %v573_v50 }
 0x2d0   :  { %884 = vpush %v583_v10 }
 0x2d1   :  { %886 = vpush %v617_v11 }
 0x2d2   :  { %888 = vpush %v642_v12  ;;  %v720_v14 = vpop.xlane.xlu1 %719 }
 0x2d3   :  { %v721_v62 = vrot.slane %v720_v14, 4 }
 0x2d5   :  { %v722_v15 = vadd.f32 %v721_v62, %v720_v14 }
 0x2d6   :  { %v764_v16 = vpop.xlane.xlu1 %763 }
 0x2d7   :  { %v723_v0 = vrot.slane %v722_v15, 2  ;;  %v765_v18 = vrot.slane %v764_v16, 4 }
 0x2d9   :  { %v766_v19 = vadd.f32 %v765_v18, %v764_v16  ;;  %v724_v20 = vadd.f32 %v723_v0, %v722_v15 }
 0x2da   :  { %v777_v21 = vpop.xlane.xlu1 %776 }
 0x2db   :  { %v767_v23 = vrot.slane %v766_v19, 2  ;;  %v778_v24 = vrot.slane %v777_v21, 4  ;;  %v725_v26 = vrot.slane %v724_v20, 1 }
 0x2dd   :  { %v779_v27 = vadd.f32 %v778_v24, %v777_v21  ;;  %v726_v28 = vadd.f32 %v725_v26, %v724_v20  ;;  %v768_v29 = vadd.f32 %v767_v23, %v766_v19 }
 0x2df   :  { %v780_v31 = vrot.slane %v779_v27, 2  ;;  %890 = vpush %v726_v28  ;;  %v769_v32 = vrot.slane %v768_v29, 1 }
 0x2e0   :  { %892 = vpush %v736_v30 }
 0x2e1   :  { %v781_v33 = vadd.f32 %v780_v31, %v779_v27  ;;  %v770_v34 = vadd.f32 %v769_v32, %v768_v29 }
 0x2e3   :  { %894 = vpush %v770_v34  ;;  %v782_v3 = vrot.slane %v781_v33, 1 }
 0x2e5   :  { %v783_v35 = vadd.f32 %v782_v3, %v781_v33 }
 0x2e7   :  { %896 = vpush %v783_v35 }
 0x300   :  { %s883_s20 = spop %882 }
 0x301   :  { %s885_s21 = spop %884  ;;  %s585_s22 = smul.f32 0.25, %s883_s20 }
 0x302   :  { %s587_s23 = smul.f32 %s885_s21, %s885_s21  ;;  %s887_s24 = spop %886 }
 0x303   :  { %s586_s25 = ssub.f32 %s881_s19, %s585_s22  ;;  %s889_s28 = spop %888 }
 0x304   :  { %s588_s26 = smul.f32 0.015625, %s587_s23  ;;  %s965_s20 = smov [#allocation14]  }
 0x306   :  { %s589_s5 = sadd.f32 %s588_s26, %s586_s25 }
 0x308   :  { %s619_s11 = ssub.f32 %s589_s5, %s887_s24 }
 0x310   :  { %s891_s30 = spop %890 }
 0x311   :  { %s738_s3 = smul.f32 0.25, %s891_s30  ;;  %s893_s4 = spop %892 }
 0x312   :  { %s740_s6 = smul.f32 %s893_s4, %s893_s4 }
 0x313   :  { %s739_s7 = ssub.f32 %s889_s28, %s738_s3 }
 0x314   :  { %s741_s8 = smul.f32 0.015625, %s740_s6  ;;  %s895_s12 = spop %894 }
 0x316   :  { %s742_s10 = sadd.f32 %s741_s8, %s739_s7 }
 0x318   :  { %s772_s13 = ssub.f32 %s742_s10, %s895_s12  ;;  %s897_s14 = spop %896 }
 0x319   :  { %s785_s15 = smul.f32 0.00390625, %s897_s14 }
 0x31a   :  { %s773_s17 = sadd.f32 %s772_s13, %s619_s11 }
 0x31b   :  { %s787_s18 = smul.f32 25.0, %s785_s15 }
 0x31c   :  { %s786_s0 = smul.f32 0.0006377551, %s773_s17 }
 0x31d   :  { %s789_s19 = sadd.f32 %s788_s16, %s787_s18 }
 0x31f   :  { %s790_s1 = sadd.f32 %s789_s19, %s786_s0 }
 0x321   :  { %792 = sst [smem:[#allocation14]] %s790_s1 }
 0x322   :  { %800 = dma.smem_to_hbm %s965_s20, 16, %s1154_s2, [#allocation11]  }
 0x323   :  { %959 = dma.done.wait [#allocation11], 16  }
 0x324   :  { %960 = vsyncadd [#allocation11], 4294967280 }
 0x325   :  { %804 = sfence }
 0x326   :  { %805 = vsyncpa [#allocation10], 1 }
 0x327   :  { %806 = vsyncpa [#allocation13], 1 }
 0x328   :  { %807 = vsyncpa [#allocation11], 1 }

</bundles_post_ra>
